<compile_context>
chip_gen: v7x
topology: tpu7x:2x2x1
jax: 0.10.0
libtpu: 0.0.40
codegen_flags: <defaults>
</compile_context>

<pallas_src>
import math

import jax
import jax.numpy as jnp
from jax.experimental import pallas as pl
from jax.experimental.pallas import tpu as pltpu


# ----------------------------------------------------------------------------
# wrapper-side glue
# ----------------------------------------------------------------------------
def _positional_encoding(length, d_model):
    """Standard sinusoidal PE, (length, d_model) float32."""
    pos = jnp.arange(length, dtype=jnp.float32)[:, None]
    i = jnp.arange(0, d_model, 2, dtype=jnp.float32)
    inv = jnp.exp(-i * (math.log(10000.0) / d_model))
    ang = pos * inv[None, :]
    pe = jnp.zeros((length, d_model), jnp.float32)
    pe = pe.at[:, 0::2].set(jnp.sin(ang))
    pe = pe.at[:, 1::2].set(jnp.cos(ang))
    return pe


# ----------------------------------------------------------------------------
# in-kernel relative shift (Transformer-XL pad/reshape trick, re-expressed as
# static lane/sublane rolls + masks; no reshapes, no selection matmuls)
# ----------------------------------------------------------------------------
def _roll_cols(x, s, n):
    s = s % n
    if s == 0:
        return x
    return jnp.concatenate([x[:, n - s:], x[:, :n - s]], axis=1)


def _roll_rows(x, s, n):
    s = s % n
    if s == 0:
        return x
    return jnp.concatenate([x[n - s:, :], x[:n - s, :]], axis=0)


def _relative_shift(ps, t):
    """Exactly reproduces torch's cat-zeros / view(T+1,T) / [1:] shift on (T,T)."""
    row = jax.lax.broadcasted_iota(jnp.int32, (t, t), 0)
    col = jax.lax.broadcasted_iota(jnp.int32, (t, t), 1)

    def shear(x, base):
        # out[i, j] = x[i, (j - (base + i)) mod t]
        y = _roll_cols(x, base, t)
        k = 1
        while k < t:
            rolled = _roll_cols(y, k, t)
            y = jnp.where((row & k) != 0, rolled, y)
            k *= 2
        return y

    piece_lo = shear(ps, 1)                       # uses row i of ps
    piece_hi = shear(_roll_rows(ps, t - 1, t), 2) # uses row i+1 of ps
    return jnp.where(col <= row, piece_lo,
                     jnp.where(col == row + 1, jnp.float32(0.0), piece_hi))


# ----------------------------------------------------------------------------
# kernel: one (batch, head) step
# ----------------------------------------------------------------------------
def _mhsa_kernel(x_ref, mask_ref, gamma_ref, beta_ref,
                 wq_ref, bq_ref, wk_ref, bk_ref, wv_ref, bv_ref,
                 ub_ref, vb_ref, p_ref, wo_ref, bo_ref,
                 out_ref, xn_ref):
    h = pl.program_id(1)
    T = x_ref.shape[1]
    D = x_ref.shape[2]
    scale = 1.0 / math.sqrt(D)

    # LayerNorm once per batch element, cached (bf16) for the remaining heads.
    @pl.when(h == 0)
    def _layer_norm():
        x = x_ref[0].astype(jnp.float32)                       # (T, D)
        mu = jnp.mean(x, axis=-1, keepdims=True)
        var = jnp.mean(jnp.square(x - mu), axis=-1, keepdims=True)
        xn = (x - mu) * jax.lax.rsqrt(var + 1e-5)
        xn = xn * gamma_ref[...] + beta_ref[...]
        xn_ref[...] = xn.astype(jnp.bfloat16)

    xn = xn_ref[...]                                           # (T, D) bf16

    # per-head projections (bf16 in, f32 accumulate)
    q = jnp.dot(xn, wq_ref[0], preferred_element_type=jnp.float32) + bq_ref[0]
    k = jnp.dot(xn, wk_ref[0], preferred_element_type=jnp.float32) + bk_ref[0]
    v = jnp.dot(xn, wv_ref[0], preferred_element_type=jnp.float32) + bv_ref[0]
    p = p_ref[0]                                               # (T, Dh) bf16

    qu = (q + ub_ref[0]).astype(jnp.bfloat16)
    qv = (q + vb_ref[0]).astype(jnp.bfloat16)
    kb = k.astype(jnp.bfloat16)

    content = jnp.einsum('td,sd->ts', qu, kb,
                         preferred_element_type=jnp.float32)   # (T, T)
    pos_sc = jnp.einsum('td,sd->ts', qv, p,
                        preferred_element_type=jnp.float32)    # (T, T)
    pos_sc = _relative_shift(pos_sc, T)

    score = (content + pos_sc) * scale
    score = jnp.where(mask_ref[0] > 0.5, jnp.float32(-1e9), score)

    # softmax (f32)
    m = jnp.max(score, axis=-1, keepdims=True)
    e = jnp.exp(score - m)
    attn = e / jnp.sum(e, axis=-1, keepdims=True)

    ctx = jnp.dot(attn.astype(jnp.bfloat16), v.astype(jnp.bfloat16),
                  preferred_element_type=jnp.float32)          # (T, Dh)
    contrib = jnp.dot(ctx.astype(jnp.bfloat16), wo_ref[0],
                      preferred_element_type=jnp.float32)      # (T, D)

    @pl.when(h == 0)
    def _init():
        out_ref[0, :, :] = contrib + bo_ref[...]

    @pl.when(h > 0)
    def _acc():
        out_ref[0, :, :] = out_ref[0, :, :] + contrib


# ----------------------------------------------------------------------------
# wrapper
# ----------------------------------------------------------------------------
def mhsa_forward(x, mask, gamma, beta, wq, bq, wk, bk, wv, bv, wpos,
                 u_bias, v_bias, wo, bo, *, num_heads):
    B, T, D = x.shape
    H = num_heads
    assert D % H == 0
    Dh = D // H
    f32, bf16 = jnp.float32, jnp.bfloat16

    # batch-invariant positional path hoisted out of the kernel
    pe = _positional_encoding(T, D)                     # (T, D)
    p = pe @ wpos.T                                     # (T, D)

    def per_head_in(w):   # torch Linear weight (Dout, Din) -> (H, Din, Dh)
        return jnp.transpose(w.T.reshape(D, H, Dh), (1, 0, 2)).astype(bf16)

    wq_h, wk_h, wv_h = per_head_in(wq), per_head_in(wk), per_head_in(wv)
    bq_h = bq.reshape(H, 1, Dh).astype(f32)
    bk_h = bk.reshape(H, 1, Dh).astype(f32)
    bv_h = bv.reshape(H, 1, Dh).astype(f32)
    u_h = u_bias.reshape(H, 1, Dh).astype(f32)
    v_h = v_bias.reshape(H, 1, Dh).astype(f32)
    p_h = jnp.transpose(p.reshape(T, H, Dh), (1, 0, 2)).astype(bf16)   # (H, T, Dh)
    wo_h = wo.T.reshape(H, Dh, D).astype(bf16)                          # (H, Dh, D)
    bo_r = bo.reshape(1, D).astype(f32)
    gamma_r = gamma.reshape(1, D).astype(f32)
    beta_r = beta.reshape(1, D).astype(f32)
    mask_f = mask.astype(f32)                                           # (B, T, T)

    head_map = lambda b, h: (h, 0, 0)
    batch_map = lambda b, h: (b, 0, 0)
    const_map = lambda b, h: (0, 0)

    out = pl.pallas_call(
        _mhsa_kernel,
        out_shape=jax.ShapeDtypeStruct((B, T, D), jnp.float32),
        grid=(B, H),
        in_specs=[
            pl.BlockSpec((1, T, D), batch_map),      # x
            pl.BlockSpec((1, T, T), batch_map),      # mask
            pl.BlockSpec((1, D), const_map),         # ln gamma
            pl.BlockSpec((1, D), const_map),         # ln beta
            pl.BlockSpec((1, D, Dh), head_map),      # Wq (per head)
            pl.BlockSpec((1, 1, Dh), head_map),      # bq
            pl.BlockSpec((1, D, Dh), head_map),      # Wk
            pl.BlockSpec((1, 1, Dh), head_map),      # bk
            pl.BlockSpec((1, D, Dh), head_map),      # Wv
            pl.BlockSpec((1, 1, Dh), head_map),      # bv
            pl.BlockSpec((1, 1, Dh), head_map),      # u_bias
            pl.BlockSpec((1, 1, Dh), head_map),      # v_bias
            pl.BlockSpec((1, T, Dh), head_map),      # pos_proj(pe) per head
            pl.BlockSpec((1, Dh, D), head_map),      # Wo rows per head
            pl.BlockSpec((1, D), const_map),         # bo
        ],
        out_specs=pl.BlockSpec((1, T, D), batch_map),
        scratch_shapes=[pltpu.VMEM((T, D), jnp.bfloat16)],   # cached LayerNorm(x)
        compiler_params=pltpu.CompilerParams(
            dimension_semantics=("parallel", "arbitrary")),
    )(x, mask_f, gamma_r, beta_r, wq_h, bq_h, wk_h, bk_h, wv_h, bv_h,
      u_h, v_h, p_h, wo_h, bo_r)
    return out


# ----------------------------------------------------------------------------
# plain-JAX reference (mirrors the PyTorch forward, f32, eval mode)
# ----------------------------------------------------------------------------
def _reference_forward(x, mask, gamma, beta, wq, bq, wk, bk, wv, bv, wpos,
                       u_bias, v_bias, wo, bo, *, num_heads):
    B, T, D = x.shape
    H = num_heads
    Dh = D // H

    mu = jnp.mean(x, axis=-1, keepdims=True)
    var = jnp.mean((x - mu) ** 2, axis=-1, keepdims=True)
    xn = (x - mu) / jnp.sqrt(var + 1e-5) * gamma + beta

    pe = _positional_encoding(T, D)
    pos = jnp.broadcast_to(pe[None], (B, T, D))

    q = xn @ wq.T + bq
    k = xn @ wk.T + bk
    v = xn @ wv.T + bv
    p = pos @ wpos.T

    q4 = q.reshape(B, T, H, Dh)
    k4 = k.reshape(B, T, H, Dh).transpose(0, 2, 1, 3)
    v4 = v.reshape(B, T, H, Dh).transpose(0, 2, 1, 3)
    p4 = p.reshape(B, T, H, Dh)

    content = jnp.matmul((q4 + u_bias).transpose(0, 2, 1, 3),
                         k4.transpose(0, 1, 3, 2))
    pos_sc = jnp.matmul((q4 + v_bias).transpose(0, 2, 1, 3),
                        p4.transpose(0, 2, 3, 1))

    zeros = jnp.zeros((B, H, T, 1), pos_sc.dtype)
    padded = jnp.concatenate([zeros, pos_sc], axis=-1).reshape(B, H, T + 1, T)
    pos_sc = padded[:, :, 1:].reshape(B, H, T, T)

    score = (content + pos_sc) / math.sqrt(D)
    score = jnp.where(mask[:, None, :, :] > 0.5, -1e9, score)
    attn = jax.nn.softmax(score, axis=-1)

    ctx = jnp.matmul(attn, v4).transpose(0, 2, 1, 3).reshape(B, T, D)
    return ctx @ wo.T + bo


# ----------------------------------------------------------------------------
# demo / self-test
# ----------------------------------------------------------------------------
if __name__ == "__main__":
    key = jax.random.PRNGKey(0)
    B, T, d_model, num_heads = 2, 8, 32, 4
    Dh = d_model // num_heads
    ks = jax.random.split(key, 16)
    s = 1.0 / math.sqrt(d_model)

    x = jax.random.normal(ks[0], (B, T, d_model), jnp.float32)
    gamma = 1.0 + 0.1 * jax.random.normal(ks[1], (d_model,), jnp.float32)
    beta = 0.1 * jax.random.normal(ks[2], (d_model,), jnp.float32)
    wq = s * jax.random.normal(ks[3], (d_model, d_model), jnp.float32)
    bq = 0.1 * jax.random.normal(ks[4], (d_model,), jnp.float32)
    wk = s * jax.random.normal(ks[5], (d_model, d_model), jnp.float32)
    bk = 0.1 * jax.random.normal(ks[6], (d_model,), jnp.float32)
    wv = s * jax.random.normal(ks[7], (d_model, d_model), jnp.float32)
    bv = 0.1 * jax.random.normal(ks[8], (d_model,), jnp.float32)
    wpos = s * jax.random.normal(ks[9], (d_model, d_model), jnp.float32)
    u_bias = s * jax.random.normal(ks[10], (num_heads, Dh), jnp.float32)
    v_bias = s * jax.random.normal(ks[11], (num_heads, Dh), jnp.float32)
    wo = s * jax.random.normal(ks[12], (d_model, d_model), jnp.float32)
    bo = 0.1 * jax.random.normal(ks[13], (d_model,), jnp.float32)

    # padding mask: batch 0 uses all T frames, batch 1 masks the last 2 keys
    lengths = jnp.array([T, T - 2], jnp.int32)
    key_pos = jnp.arange(T)[None, :]
    mask_1d = (key_pos >= lengths[:, None]).astype(jnp.float32)        # (B, T)
    mask = jnp.broadcast_to(mask_1d[:, None, :], (B, T, T))            # (B, T, T)

    out = mhsa_forward(x, mask, gamma, beta, wq, bq, wk, bk, wv, bv, wpos,
                       u_bias, v_bias, wo, bo, num_heads=num_heads)
    out = jax.block_until_ready(out)

    ref = _reference_forward(x, mask, gamma, beta, wq, bq, wk, bk, wv, bv, wpos,
                             u_bias, v_bias, wo, bo, num_heads=num_heads)

    assert out.shape == (B, T, d_model)
    err = float(jnp.max(jnp.abs(out - ref)))
    assert jnp.allclose(out, ref, atol=3e-2, rtol=3e-2), f"max abs diff {err}"
    print("KERNEL_OK")
</pallas_src>

<mosaic_0001>
module attributes {stable_mosaic.version = 11 : i64} {
  func.func @_mhsa_kernel(%arg0: i32, %arg1: i32, %arg2: memref<1x8x32xf32, #tpu.memory_space<vmem>>, %arg3: memref<1x8x8xf32, #tpu.memory_space<vmem>>, %arg4: memref<1x32xf32, #tpu.memory_space<vmem>>, %arg5: memref<1x32xf32, #tpu.memory_space<vmem>>, %arg6: memref<1x32x8xbf16, #tpu.memory_space<vmem>>, %arg7: memref<1x1x8xf32, #tpu.memory_space<vmem>>, %arg8: memref<1x32x8xbf16, #tpu.memory_space<vmem>>, %arg9: memref<1x1x8xf32, #tpu.memory_space<vmem>>, %arg10: memref<1x32x8xbf16, #tpu.memory_space<vmem>>, %arg11: memref<1x1x8xf32, #tpu.memory_space<vmem>>, %arg12: memref<1x1x8xf32, #tpu.memory_space<vmem>>, %arg13: memref<1x1x8xf32, #tpu.memory_space<vmem>>, %arg14: memref<1x8x8xbf16, #tpu.memory_space<vmem>>, %arg15: memref<1x8x32xbf16, #tpu.memory_space<vmem>>, %arg16: memref<1x32xf32, #tpu.memory_space<vmem>>, %arg17: memref<1x8x32xf32, #tpu.memory_space<vmem>>, %arg18: memref<8x32xbf16, #tpu.memory_space<vmem>>) attributes {dimension_semantics = [#tpu.dimension_semantics<parallel>, #tpu.dimension_semantics<arbitrary>], iteration_bounds = array<i64: 2, 4>, scalar_prefetch = 0 : i64, scratch_operands = 1 : i64, tpu.core_type = #tpu.core_type<tc>, window_params = [{transform_indices = @transform_0, window_bounds = array<i64: 1, 8, 32>}, {transform_indices = @transform_1, window_bounds = array<i64: 1, 8, 8>}, {pipeline_mode = #tpu.pipeline_mode<synchronous>, transform_indices = @transform_2, window_bounds = array<i64: 1, 32>}, {pipeline_mode = #tpu.pipeline_mode<synchronous>, transform_indices = @transform_3, window_bounds = array<i64: 1, 32>}, {transform_indices = @transform_4, window_bounds = array<i64: 1, 32, 8>}, {transform_indices = @transform_5, window_bounds = array<i64: 1, 1, 8>}, {transform_indices = @transform_6, window_bounds = array<i64: 1, 32, 8>}, {transform_indices = @transform_7, window_bounds = array<i64: 1, 1, 8>}, {transform_indices = @transform_8, window_bounds = array<i64: 1, 32, 8>}, {transform_indices = @transform_9, window_bounds = array<i64: 1, 1, 8>}, {transform_indices = @transform_10, window_bounds = array<i64: 1, 1, 8>}, {transform_indices = @transform_11, window_bounds = array<i64: 1, 1, 8>}, {transform_indices = @transform_12, window_bounds = array<i64: 1, 8, 8>}, {transform_indices = @transform_13, window_bounds = array<i64: 1, 8, 32>}, {pipeline_mode = #tpu.pipeline_mode<synchronous>, transform_indices = @transform_14, window_bounds = array<i64: 1, 32>}, {transform_indices = @transform_15, window_bounds = array<i64: 1, 8, 32>}]} {
    %c0_i32 = arith.constant 0 : i32
    %0 = arith.cmpi eq, %arg1, %c0_i32 : i32
    %1 = arith.extui %0 : i1 to i32
    %c0_i32_0 = arith.constant 0 : i32
    %2 = arith.cmpi ne, %1, %c0_i32_0 : i32
    scf.if %2 {
      %c0_61 = arith.constant 0 : index
      %c0_62 = arith.constant 0 : index
      %c0_63 = arith.constant 0 : index
      %137 = vector.load %arg2[%c0_61, %c0_62, %c0_63] : memref<1x8x32xf32, #tpu.memory_space<vmem>>, vector<1x8x32xf32>
      %138 = vector.shape_cast %137 : vector<1x8x32xf32> to vector<8x32xf32>
      %cst_64 = arith.constant dense<0.000000e+00> : vector<8xf32>
      %139 = vector.multi_reduction <add>, %138, %cst_64 [1] : vector<8x32xf32> to vector<8xf32>
      %140 = vector.shape_cast %139 : vector<8xf32> to vector<8x1xf32>
      %cst_65 = arith.constant 3.200000e+01 : f32
      %141 = vector.broadcast %cst_65 : f32 to vector<8x1xf32>
      %142 = arith.divf %140, %141 : vector<8x1xf32>
      %143 = vector.broadcast %142 : vector<8x1xf32> to vector<8x32xf32>
      %144 = arith.subf %138, %143 : vector<8x32xf32>
      %145 = arith.mulf %144, %144 : vector<8x32xf32>
      %cst_66 = arith.constant dense<0.000000e+00> : vector<8xf32>
      %146 = vector.multi_reduction <add>, %145, %cst_66 [1] : vector<8x32xf32> to vector<8xf32>
      %147 = vector.shape_cast %146 : vector<8xf32> to vector<8x1xf32>
      %cst_67 = arith.constant 3.200000e+01 : f32
      %148 = vector.broadcast %cst_67 : f32 to vector<8x1xf32>
      %149 = arith.divf %147, %148 : vector<8x1xf32>
      %150 = vector.broadcast %142 : vector<8x1xf32> to vector<8x32xf32>
      %151 = arith.subf %138, %150 : vector<8x32xf32>
      %cst_68 = arith.constant 9.99999974E-6 : f32
      %152 = vector.broadcast %cst_68 : f32 to vector<8x1xf32>
      %153 = arith.addf %149, %152 : vector<8x1xf32>
      %154 = math.rsqrt %153 : vector<8x1xf32>
      %155 = vector.broadcast %154 : vector<8x1xf32> to vector<8x32xf32>
      %156 = arith.mulf %151, %155 : vector<8x32xf32>
      %c0_69 = arith.constant 0 : index
      %c0_70 = arith.constant 0 : index
      %157 = vector.load %arg4[%c0_69, %c0_70] : memref<1x32xf32, #tpu.memory_space<vmem>>, vector<1x32xf32>
      %158 = vector.broadcast %157 : vector<1x32xf32> to vector<8x32xf32>
      %159 = arith.mulf %156, %158 : vector<8x32xf32>
      %c0_71 = arith.constant 0 : index
      %c0_72 = arith.constant 0 : index
      %160 = vector.load %arg5[%c0_71, %c0_72] : memref<1x32xf32, #tpu.memory_space<vmem>>, vector<1x32xf32>
      %161 = vector.broadcast %160 : vector<1x32xf32> to vector<8x32xf32>
      %162 = arith.addf %159, %161 : vector<8x32xf32>
      %163 = arith.truncf %162 : vector<8x32xf32> to vector<8x32xbf16>
      %c0_73 = arith.constant 0 : index
      %c0_74 = arith.constant 0 : index
      %164 = vector.load %arg18[%c0_73, %c0_74] : memref<8x32xbf16, #tpu.memory_space<vmem>>, vector<8x32xbf16>
      tpu.vector_store %arg18[%c0_73, %c0_74], %163 {strides = array<i32>} : memref<8x32xbf16, #tpu.memory_space<vmem>>, vector<8x32xbf16>,
    } else {
    }
    %c0 = arith.constant 0 : index
    %c0_1 = arith.constant 0 : index
    %3 = vector.load %arg18[%c0, %c0_1] : memref<8x32xbf16, #tpu.memory_space<vmem>>, vector<8x32xbf16>
    %c0_2 = arith.constant 0 : index
    %c0_3 = arith.constant 0 : index
    %c0_4 = arith.constant 0 : index
    %4 = vector.load %arg6[%c0_2, %c0_3, %c0_4] : memref<1x32x8xbf16, #tpu.memory_space<vmem>>, vector<1x32x8xbf16>
    %5 = vector.shape_cast %4 : vector<1x32x8xbf16> to vector<32x8xbf16>
    %cst = arith.constant dense<0.000000e+00> : vector<8x8xf32>
    %6 = tpu.matmul %3, %5, %cst {dimension_numbers = #tpu.dot_dimension_numbers<[1], [0], [0], [1], [0, 0, 1, 1], [], []>} : vector<8x32xbf16>, vector<32x8xbf16>, vector<8x8xf32> -> vector<8x8xf32>
    %c0_5 = arith.constant 0 : index
    %c0_6 = arith.constant 0 : index
    %c0_7 = arith.constant 0 : index
    %7 = vector.load %arg7[%c0_5, %c0_6, %c0_7] : memref<1x1x8xf32, #tpu.memory_space<vmem>>, vector<1x1x8xf32>
    %8 = vector.shape_cast %7 : vector<1x1x8xf32> to vector<1x8xf32>
    %9 = vector.broadcast %8 : vector<1x8xf32> to vector<8x8xf32>
    %10 = arith.addf %6, %9 : vector<8x8xf32>
    %c0_8 = arith.constant 0 : index
    %c0_9 = arith.constant 0 : index
    %c0_10 = arith.constant 0 : index
    %11 = vector.load %arg8[%c0_8, %c0_9, %c0_10] : memref<1x32x8xbf16, #tpu.memory_space<vmem>>, vector<1x32x8xbf16>
    %12 = vector.shape_cast %11 : vector<1x32x8xbf16> to vector<32x8xbf16>
    %cst_11 = arith.constant dense<0.000000e+00> : vector<8x8xf32>
    %13 = tpu.matmul %3, %12, %cst_11 {dimension_numbers = #tpu.dot_dimension_numbers<[1], [0], [0], [1], [0, 0, 1, 1], [], []>} : vector<8x32xbf16>, vector<32x8xbf16>, vector<8x8xf32> -> vector<8x8xf32>
    %c0_12 = arith.constant 0 : index
    %c0_13 = arith.constant 0 : index
    %c0_14 = arith.constant 0 : index
    %14 = vector.load %arg9[%c0_12, %c0_13, %c0_14] : memref<1x1x8xf32, #tpu.memory_space<vmem>>, vector<1x1x8xf32>
    %15 = vector.shape_cast %14 : vector<1x1x8xf32> to vector<1x8xf32>
    %16 = vector.broadcast %15 : vector<1x8xf32> to vector<8x8xf32>
    %17 = arith.addf %13, %16 : vector<8x8xf32>
    %c0_15 = arith.constant 0 : index
    %c0_16 = arith.constant 0 : index
    %c0_17 = arith.constant 0 : index
    %18 = vector.load %arg10[%c0_15, %c0_16, %c0_17] : memref<1x32x8xbf16, #tpu.memory_space<vmem>>, vector<1x32x8xbf16>
    %19 = vector.shape_cast %18 : vector<1x32x8xbf16> to vector<32x8xbf16>
    %cst_18 = arith.constant dense<0.000000e+00> : vector<8x8xf32>
    %20 = tpu.matmul %3, %19, %cst_18 {dimension_numbers = #tpu.dot_dimension_numbers<[1], [0], [0], [1], [0, 0, 1, 1], [], []>} : vector<8x32xbf16>, vector<32x8xbf16>, vector<8x8xf32> -> vector<8x8xf32>
    %c0_19 = arith.constant 0 : index
    %c0_20 = arith.constant 0 : index
    %c0_21 = arith.constant 0 : index
    %21 = vector.load %arg11[%c0_19, %c0_20, %c0_21] : memref<1x1x8xf32, #tpu.memory_space<vmem>>, vector<1x1x8xf32>
    %22 = vector.shape_cast %21 : vector<1x1x8xf32> to vector<1x8xf32>
    %23 = vector.broadcast %22 : vector<1x8xf32> to vector<8x8xf32>
    %24 = arith.addf %20, %23 : vector<8x8xf32>
    %c0_22 = arith.constant 0 : index
    %c0_23 = arith.constant 0 : index
    %c0_24 = arith.constant 0 : index
    %25 = vector.load %arg14[%c0_22, %c0_23, %c0_24] : memref<1x8x8xbf16, #tpu.memory_space<vmem>>, vector<1x8x8xbf16>
    %26 = vector.shape_cast %25 : vector<1x8x8xbf16> to vector<8x8xbf16>
    %c0_25 = arith.constant 0 : index
    %c0_26 = arith.constant 0 : index
    %c0_27 = arith.constant 0 : index
    %27 = vector.load %arg12[%c0_25, %c0_26, %c0_27] : memref<1x1x8xf32, #tpu.memory_space<vmem>>, vector<1x1x8xf32>
    %28 = vector.shape_cast %27 : vector<1x1x8xf32> to vector<1x8xf32>
    %29 = vector.broadcast %28 : vector<1x8xf32> to vector<8x8xf32>
    %30 = arith.addf %10, %29 : vector<8x8xf32>
    %31 = arith.truncf %30 : vector<8x8xf32> to vector<8x8xbf16>
    %c0_28 = arith.constant 0 : index
    %c0_29 = arith.constant 0 : index
    %c0_30 = arith.constant 0 : index
    %32 = vector.load %arg13[%c0_28, %c0_29, %c0_30] : memref<1x1x8xf32, #tpu.memory_space<vmem>>, vector<1x1x8xf32>
    %33 = vector.shape_cast %32 : vector<1x1x8xf32> to vector<1x8xf32>
    %34 = vector.broadcast %33 : vector<1x8xf32> to vector<8x8xf32>
    %35 = arith.addf %10, %34 : vector<8x8xf32>
    %36 = arith.truncf %35 : vector<8x8xf32> to vector<8x8xbf16>
    %37 = arith.truncf %17 : vector<8x8xf32> to vector<8x8xbf16>
    "tpu.trace_start"() <{level = 10 : i32, message = "td,sd->ts"}> : () -> ()
    %cst_31 = arith.constant dense<0.000000e+00> : vector<8x8xf32>
    %38 = tpu.matmul %31, %37, %cst_31 {dimension_numbers = #tpu.dot_dimension_numbers<[1], [1], [0], [0], [0, 0, 1, 0], [], []>} : vector<8x8xbf16>, vector<8x8xbf16>, vector<8x8xf32> -> vector<8x8xf32>
    %cst_32 = arith.constant dense<0.000000e+00> : vector<8x8xf32>
    %39 = tpu.matmul %36, %26, %cst_32 {dimension_numbers = #tpu.dot_dimension_numbers<[1], [1], [0], [0], [0, 0, 1, 0], [], []>} : vector<8x8xbf16>, vector<8x8xbf16>, vector<8x8xf32> -> vector<8x8xf32>
    "tpu.trace_stop"() : () -> ()
    %40 = tpu.iota {dimensions = array<i32: 0>} : vector<8x8xi32>
    %41 = tpu.iota {dimensions = array<i32: 1>} : vector<8x8xi32>
    %42 = vector.extract_strided_slice %39 {offsets = [0, 7], sizes = [8, 1], strides = [1, 1]} : vector<8x8xf32> to vector<8x1xf32>
    %43 = vector.extract_strided_slice %39 {offsets = [0, 0], sizes = [8, 7], strides = [1, 1]} : vector<8x8xf32> to vector<8x7xf32>
    %44 = tpu.concatenate %42, %43 in 1 : vector<8x1xf32>, vector<8x7xf32> -> vector<8x8xf32>
    %45 = vector.extract_strided_slice %44 {offsets = [0, 7], sizes = [8, 1], strides = [1, 1]} : vector<8x8xf32> to vector<8x1xf32>
    %46 = vector.extract_strided_slice %44 {offsets = [0, 0], sizes = [8, 7], strides = [1, 1]} : vector<8x8xf32> to vector<8x7xf32>
    %47 = tpu.concatenate %45, %46 in 1 : vector<8x1xf32>, vector<8x7xf32> -> vector<8x8xf32>
    %c1_i32 = arith.constant 1 : i32
    %48 = vector.broadcast %c1_i32 : i32 to vector<8x8xi32>
    %49 = arith.andi %40, %48 : vector<8x8xi32>
    %c0_i32_33 = arith.constant 0 : i32
    %50 = vector.broadcast %c0_i32_33 : i32 to vector<8x8xi32>
    %51 = arith.cmpi ne, %49, %50 : vector<8x8xi32>
    %52 = arith.select %51, %47, %44 : vector<8x8xi1>, vector<8x8xf32>
    %53 = vector.extract_strided_slice %52 {offsets = [0, 6], sizes = [8, 2], strides = [1, 1]} : vector<8x8xf32> to vector<8x2xf32>
    %54 = vector.extract_strided_slice %52 {offsets = [0, 0], sizes = [8, 6], strides = [1, 1]} : vector<8x8xf32> to vector<8x6xf32>
    %55 = tpu.concatenate %53, %54 in 1 : vector<8x2xf32>, vector<8x6xf32> -> vector<8x8xf32>
    %c2_i32 = arith.constant 2 : i32
    %56 = vector.broadcast %c2_i32 : i32 to vector<8x8xi32>
    %57 = arith.andi %40, %56 : vector<8x8xi32>
    %c0_i32_34 = arith.constant 0 : i32
    %58 = vector.broadcast %c0_i32_34 : i32 to vector<8x8xi32>
    %59 = arith.cmpi ne, %57, %58 : vector<8x8xi32>
    %60 = arith.select %59, %55, %52 : vector<8x8xi1>, vector<8x8xf32>
    %61 = vector.extract_strided_slice %60 {offsets = [0, 4], sizes = [8, 4], strides = [1, 1]} : vector<8x8xf32> to vector<8x4xf32>
    %62 = vector.extract_strided_slice %60 {offsets = [0, 0], sizes = [8, 4], strides = [1, 1]} : vector<8x8xf32> to vector<8x4xf32>
    %63 = tpu.concatenate %61, %62 in 1 : vector<8x4xf32>, vector<8x4xf32> -> vector<8x8xf32>
    %c4_i32 = arith.constant 4 : i32
    %64 = vector.broadcast %c4_i32 : i32 to vector<8x8xi32>
    %65 = arith.andi %40, %64 : vector<8x8xi32>
    %c0_i32_35 = arith.constant 0 : i32
    %66 = vector.broadcast %c0_i32_35 : i32 to vector<8x8xi32>
    %67 = arith.cmpi ne, %65, %66 : vector<8x8xi32>
    %68 = arith.select %67, %63, %60 : vector<8x8xi1>, vector<8x8xf32>
    %69 = vector.extract_strided_slice %39 {offsets = [1, 0], sizes = [7, 8], strides = [1, 1]} : vector<8x8xf32> to vector<7x8xf32>
    %70 = vector.extract_strided_slice %39 {offsets = [0, 0], sizes = [1, 8], strides = [1, 1]} : vector<8x8xf32> to vector<1x8xf32>
    %71 = tpu.concatenate %69, %70 in 0 : vector<7x8xf32>, vector<1x8xf32> -> vector<8x8xf32>
    %72 = vector.extract_strided_slice %71 {offsets = [0, 6], sizes = [8, 2], strides = [1, 1]} : vector<8x8xf32> to vector<8x2xf32>
    %73 = vector.extract_strided_slice %71 {offsets = [0, 0], sizes = [8, 6], strides = [1, 1]} : vector<8x8xf32> to vector<8x6xf32>
    %74 = tpu.concatenate %72, %73 in 1 : vector<8x2xf32>, vector<8x6xf32> -> vector<8x8xf32>
    %75 = vector.extract_strided_slice %74 {offsets = [0, 7], sizes = [8, 1], strides = [1, 1]} : vector<8x8xf32> to vector<8x1xf32>
    %76 = vector.extract_strided_slice %74 {offsets = [0, 0], sizes = [8, 7], strides = [1, 1]} : vector<8x8xf32> to vector<8x7xf32>
    %77 = tpu.concatenate %75, %76 in 1 : vector<8x1xf32>, vector<8x7xf32> -> vector<8x8xf32>
    %c1_i32_36 = arith.constant 1 : i32
    %78 = vector.broadcast %c1_i32_36 : i32 to vector<8x8xi32>
    %79 = arith.andi %40, %78 : vector<8x8xi32>
    %c0_i32_37 = arith.constant 0 : i32
    %80 = vector.broadcast %c0_i32_37 : i32 to vector<8x8xi32>
    %81 = arith.cmpi ne, %79, %80 : vector<8x8xi32>
    %82 = arith.select %81, %77, %74 : vector<8x8xi1>, vector<8x8xf32>
    %83 = vector.extract_strided_slice %82 {offsets = [0, 6], sizes = [8, 2], strides = [1, 1]} : vector<8x8xf32> to vector<8x2xf32>
    %84 = vector.extract_strided_slice %82 {offsets = [0, 0], sizes = [8, 6], strides = [1, 1]} : vector<8x8xf32> to vector<8x6xf32>
    %85 = tpu.concatenate %83, %84 in 1 : vector<8x2xf32>, vector<8x6xf32> -> vector<8x8xf32>
    %c2_i32_38 = arith.constant 2 : i32
    %86 = vector.broadcast %c2_i32_38 : i32 to vector<8x8xi32>
    %87 = arith.andi %40, %86 : vector<8x8xi32>
    %c0_i32_39 = arith.constant 0 : i32
    %88 = vector.broadcast %c0_i32_39 : i32 to vector<8x8xi32>
    %89 = arith.cmpi ne, %87, %88 : vector<8x8xi32>
    %90 = arith.select %89, %85, %82 : vector<8x8xi1>, vector<8x8xf32>
    %91 = vector.extract_strided_slice %90 {offsets = [0, 4], sizes = [8, 4], strides = [1, 1]} : vector<8x8xf32> to vector<8x4xf32>
    %92 = vector.extract_strided_slice %90 {offsets = [0, 0], sizes = [8, 4], strides = [1, 1]} : vector<8x8xf32> to vector<8x4xf32>
    %93 = tpu.concatenate %91, %92 in 1 : vector<8x4xf32>, vector<8x4xf32> -> vector<8x8xf32>
    %c4_i32_40 = arith.constant 4 : i32
    %94 = vector.broadcast %c4_i32_40 : i32 to vector<8x8xi32>
    %95 = arith.andi %40, %94 : vector<8x8xi32>
    %c0_i32_41 = arith.constant 0 : i32
    %96 = vector.broadcast %c0_i32_41 : i32 to vector<8x8xi32>
    %97 = arith.cmpi ne, %95, %96 : vector<8x8xi32>
    %98 = arith.select %97, %93, %90 : vector<8x8xi1>, vector<8x8xf32>
    %99 = arith.cmpi sle, %41, %40 : vector<8x8xi32>
    %c1_i32_42 = arith.constant 1 : i32
    %100 = vector.broadcast %c1_i32_42 : i32 to vector<8x8xi32>
    %101 = arith.addi %40, %100 : vector<8x8xi32>
    %102 = arith.cmpi eq, %41, %101 : vector<8x8xi32>
    %cst_43 = arith.constant 0.000000e+00 : f32
    %103 = vector.broadcast %cst_43 : f32 to vector<8x8xf32>
    %104 = arith.select %102, %103, %98 : vector<8x8xi1>, vector<8x8xf32>
    %105 = arith.select %99, %68, %104 : vector<8x8xi1>, vector<8x8xf32>
    %106 = arith.addf %38, %105 : vector<8x8xf32>
    %cst_44 = arith.constant 0.176776692 : f32
    %107 = vector.broadcast %cst_44 : f32 to vector<8x8xf32>
    %108 = arith.mulf %106, %107 : vector<8x8xf32>
    %c0_45 = arith.constant 0 : index
    %c0_46 = arith.constant 0 : index
    %c0_47 = arith.constant 0 : index
    %109 = vector.load %arg3[%c0_45, %c0_46, %c0_47] : memref<1x8x8xf32, #tpu.memory_space<vmem>>, vector<1x8x8xf32>
    %110 = vector.shape_cast %109 : vector<1x8x8xf32> to vector<8x8xf32>
    %cst_48 = arith.constant 5.000000e-01 : f32
    %111 = vector.broadcast %cst_48 : f32 to vector<8x8xf32>
    %112 = arith.cmpf ogt, %110, %111 : vector<8x8xf32>
    %cst_49 = arith.constant -1.000000e+09 : f32
    %113 = vector.broadcast %cst_49 : f32 to vector<8x8xf32>
    %114 = arith.select %112, %113, %108 : vector<8x8xi1>, vector<8x8xf32>
    %cst_50 = arith.constant dense<0xFF800000> : vector<8xf32>
    %115 = vector.multi_reduction <maximumf>, %114, %cst_50 [1] : vector<8x8xf32> to vector<8xf32>
    %116 = vector.shape_cast %115 : vector<8xf32> to vector<8x1xf32>
    %117 = vector.broadcast %116 : vector<8x1xf32> to vector<8x8xf32>
    %118 = arith.subf %114, %117 : vector<8x8xf32>
    %119 = math.exp %118 : vector<8x8xf32>
    %cst_51 = arith.constant dense<0.000000e+00> : vector<8xf32>
    %120 = vector.multi_reduction <add>, %119, %cst_51 [1] : vector<8x8xf32> to vector<8xf32>
    %121 = vector.shape_cast %120 : vector<8xf32> to vector<8x1xf32>
    %122 = vector.broadcast %121 : vector<8x1xf32> to vector<8x8xf32>
    %123 = arith.divf %119, %122 : vector<8x8xf32>
    %124 = arith.truncf %123 : vector<8x8xf32> to vector<8x8xbf16>
    %125 = arith.truncf %24 : vector<8x8xf32> to vector<8x8xbf16>
    %cst_52 = arith.constant dense<0.000000e+00> : vector<8x8xf32>
    %126 = tpu.matmul %124, %125, %cst_52 {dimension_numbers = #tpu.dot_dimension_numbers<[1], [0], [0], [1], [0, 0, 1, 1], [], []>} : vector<8x8xbf16>, vector<8x8xbf16>, vector<8x8xf32> -> vector<8x8xf32>
    %127 = arith.truncf %126 : vector<8x8xf32> to vector<8x8xbf16>
    %c0_53 = arith.constant 0 : index
    %c0_54 = arith.constant 0 : index
    %c0_55 = arith.constant 0 : index
    %128 = vector.load %arg15[%c0_53, %c0_54, %c0_55] : memref<1x8x32xbf16, #tpu.memory_space<vmem>>, vector<1x8x32xbf16>
    %129 = vector.shape_cast %128 : vector<1x8x32xbf16> to vector<8x32xbf16>
    %cst_56 = arith.constant dense<0.000000e+00> : vector<8x32xf32>
    %130 = tpu.matmul %127, %129, %cst_56 {dimension_numbers = #tpu.dot_dimension_numbers<[1], [0], [0], [1], [0, 0, 1, 1], [], []>} : vector<8x8xbf16>, vector<8x32xbf16>, vector<8x32xf32> -> vector<8x32xf32>
    %c0_i32_57 = arith.constant 0 : i32
    %131 = arith.cmpi eq, %arg1, %c0_i32_57 : i32
    %132 = arith.extui %131 : i1 to i32
    %c0_i32_58 = arith.constant 0 : i32
    %133 = arith.cmpi ne, %132, %c0_i32_58 : i32
    scf.if %133 {
      %c0_61 = arith.constant 0 : index
      %c0_62 = arith.constant 0 : index
      %137 = vector.load %arg16[%c0_61, %c0_62] : memref<1x32xf32, #tpu.memory_space<vmem>>, vector<1x32xf32>
      %138 = vector.broadcast %137 : vector<1x32xf32> to vector<8x32xf32>
      %139 = arith.addf %130, %138 : vector<8x32xf32>
      %c0_63 = arith.constant 0 : index
      %c0_64 = arith.constant 0 : index
      %c0_65 = arith.constant 0 : index
      %140 = vector.load %arg17[%c0_63, %c0_64, %c0_65] : memref<1x8x32xf32, #tpu.memory_space<vmem>>, vector<1x8x32xf32>
      %141 = vector.shape_cast %140 : vector<1x8x32xf32> to vector<8x32xf32>
      %142 = vector.shape_cast %139 : vector<8x32xf32> to vector<1x8x32xf32>
      tpu.vector_store %arg17[%c0_63, %c0_64, %c0_65], %142 {strides = array<i32>} : memref<1x8x32xf32, #tpu.memory_space<vmem>>, vector<1x8x32xf32>,
    } else {
    }
    %c0_i32_59 = arith.constant 0 : i32
    %134 = arith.cmpi sgt, %arg1, %c0_i32_59 : i32
    %135 = arith.extui %134 : i1 to i32
    %c0_i32_60 = arith.constant 0 : i32
    %136 = arith.cmpi ne, %135, %c0_i32_60 : i32
    scf.if %136 {
      %c0_61 = arith.constant 0 : index
      %c0_62 = arith.constant 0 : index
      %c0_63 = arith.constant 0 : index
      %137 = vector.load %arg17[%c0_61, %c0_62, %c0_63] : memref<1x8x32xf32, #tpu.memory_space<vmem>>, vector<1x8x32xf32>
      %138 = vector.shape_cast %137 : vector<1x8x32xf32> to vector<8x32xf32>
      %139 = arith.addf %138, %130 : vector<8x32xf32>
      %c0_64 = arith.constant 0 : index
      %c0_65 = arith.constant 0 : index
      %c0_66 = arith.constant 0 : index
      %140 = vector.load %arg17[%c0_64, %c0_65, %c0_66] : memref<1x8x32xf32, #tpu.memory_space<vmem>>, vector<1x8x32xf32>
      %141 = vector.shape_cast %140 : vector<1x8x32xf32> to vector<8x32xf32>
      %142 = vector.shape_cast %139 : vector<8x32xf32> to vector<1x8x32xf32>
      tpu.vector_store %arg17[%c0_64, %c0_65, %c0_66], %142 {strides = array<i32>} : memref<1x8x32xf32, #tpu.memory_space<vmem>>, vector<1x8x32xf32>,
    } else {
    }
    return
  }
  func.func @transform_0(%arg0: i32, %arg1: i32) -> (i32, i32, i32) {
    %c0_i32 = arith.constant 0 : i32
    %c0_i32_0 = arith.constant 0 : i32
    %c0_i32_1 = arith.constant 0 : i32
    return %arg0, %c0_i32, %c0_i32_0 : i32, i32, i32
  }
  func.func @transform_1(%arg0: i32, %arg1: i32) -> (i32, i32, i32) {
    %c0_i32 = arith.constant 0 : i32
    %c0_i32_0 = arith.constant 0 : i32
    %c0_i32_1 = arith.constant 0 : i32
    return %arg0, %c0_i32, %c0_i32_0 : i32, i32, i32
  }
  func.func @transform_2(%arg0: i32, %arg1: i32) -> (i32, i32) {
    %c0_i32 = arith.constant 0 : i32
    %c0_i32_0 = arith.constant 0 : i32
    %c0_i32_1 = arith.constant 0 : i32
    return %c0_i32, %c0_i32_0 : i32, i32
  }
  func.func @transform_3(%arg0: i32, %arg1: i32) -> (i32, i32) {
    %c0_i32 = arith.constant 0 : i32
    %c0_i32_0 = arith.constant 0 : i32
    %c0_i32_1 = arith.constant 0 : i32
    return %c0_i32, %c0_i32_0 : i32, i32
  }
  func.func @transform_4(%arg0: i32, %arg1: i32) -> (i32, i32, i32) {
    %c0_i32 = arith.constant 0 : i32
    %c0_i32_0 = arith.constant 0 : i32
    %c0_i32_1 = arith.constant 0 : i32
    return %arg1, %c0_i32, %c0_i32_0 : i32, i32, i32
  }
  func.func @transform_5(%arg0: i32, %arg1: i32) -> (i32, i32, i32) {
    %c0_i32 = arith.constant 0 : i32
    %c0_i32_0 = arith.constant 0 : i32
    %c0_i32_1 = arith.constant 0 : i32
    return %arg1, %c0_i32, %c0_i32_0 : i32, i32, i32
  }
  func.func @transform_6(%arg0: i32, %arg1: i32) -> (i32, i32, i32) {
    %c0_i32 = arith.constant 0 : i32
    %c0_i32_0 = arith.constant 0 : i32
    %c0_i32_1 = arith.constant 0 : i32
    return %arg1, %c0_i32, %c0_i32_0 : i32, i32, i32
  }
  func.func @transform_7(%arg0: i32, %arg1: i32) -> (i32, i32, i32) {
    %c0_i32 = arith.constant 0 : i32
    %c0_i32_0 = arith.constant 0 : i32
    %c0_i32_1 = arith.constant 0 : i32
    return %arg1, %c0_i32, %c0_i32_0 : i32, i32, i32
  }
  func.func @transform_8(%arg0: i32, %arg1: i32) -> (i32, i32, i32) {
    %c0_i32 = arith.constant 0 : i32
    %c0_i32_0 = arith.constant 0 : i32
    %c0_i32_1 = arith.constant 0 : i32
    return %arg1, %c0_i32, %c0_i32_0 : i32, i32, i32
  }
  func.func @transform_9(%arg0: i32, %arg1: i32) -> (i32, i32, i32) {
    %c0_i32 = arith.constant 0 : i32
    %c0_i32_0 = arith.constant 0 : i32
    %c0_i32_1 = arith.constant 0 : i32
    return %arg1, %c0_i32, %c0_i32_0 : i32, i32, i32
  }
  func.func @transform_10(%arg0: i32, %arg1: i32) -> (i32, i32, i32) {
    %c0_i32 = arith.constant 0 : i32
    %c0_i32_0 = arith.constant 0 : i32
    %c0_i32_1 = arith.constant 0 : i32
    return %arg1, %c0_i32, %c0_i32_0 : i32, i32, i32
  }
  func.func @transform_11(%arg0: i32, %arg1: i32) -> (i32, i32, i32) {
    %c0_i32 = arith.constant 0 : i32
    %c0_i32_0 = arith.constant 0 : i32
    %c0_i32_1 = arith.constant 0 : i32
    return %arg1, %c0_i32, %c0_i32_0 : i32, i32, i32
  }
  func.func @transform_12(%arg0: i32, %arg1: i32) -> (i32, i32, i32) {
    %c0_i32 = arith.constant 0 : i32
    %c0_i32_0 = arith.constant 0 : i32
    %c0_i32_1 = arith.constant 0 : i32
    return %arg1, %c0_i32, %c0_i32_0 : i32, i32, i32
  }
  func.func @transform_13(%arg0: i32, %arg1: i32) -> (i32, i32, i32) {
    %c0_i32 = arith.constant 0 : i32
    %c0_i32_0 = arith.constant 0 : i32
    %c0_i32_1 = arith.constant 0 : i32
    return %arg1, %c0_i32, %c0_i32_0 : i32, i32, i32
  }
  func.func @transform_14(%arg0: i32, %arg1: i32) -> (i32, i32) {
    %c0_i32 = arith.constant 0 : i32
    %c0_i32_0 = arith.constant 0 : i32
    %c0_i32_1 = arith.constant 0 : i32
    return %c0_i32, %c0_i32_0 : i32, i32
  }
  func.func @transform_15(%arg0: i32, %arg1: i32) -> (i32, i32, i32) {
    %c0_i32 = arith.constant 0 : i32
    %c0_i32_0 = arith.constant 0 : i32
    %c0_i32_1 = arith.constant 0 : i32
    return %arg0, %c0_i32, %c0_i32_0 : i32, i32, i32
  }
}

</mosaic_0001>

<bundles_post_ra>
// kernel: tpu_custom_call.1
= control target key start
LH: loop header
LB: loop body
LE: loop exit
PB: predicated region body
PF: predicated region fallthrough
CT: control target
= control target key end

     0   :  { %s2120_s0 = inlined_call_operand.vmem [shape: f32[2,8,32], index: 0, kind: input, shape index: {}]   ;;  %s2121_s1 = inlined_call_operand.vmem [shape: f32[2,8,8], index: 1, kind: input, shape index: {}]   ;;  %s2122_s2 = inlined_call_operand.vmem [shape: f32[1,32], index: 2, kind: input, shape index: {}]   ;;  %s2123_s3 = inlined_call_operand.vmem [shape: f32[1,32], index: 3, kind: input, shape index: {}]   ;;  %s2124_s4 = inlined_call_operand.vmem [shape: bf16[4,32,8], index: 4, kind: input, shape index: {}]   ;;  %s2125_s5 = inlined_call_operand.vmem [shape: f32[4,1,8], index: 5, kind: input, shape index: {}]   ;;  %s2126_s6 = inlined_call_operand.vmem [shape: bf16[4,32,8], index: 6, kind: input, shape index: {}]   ;;  %s2127_s7 = inlined_call_operand.vmem [shape: f32[4,1,8], index: 7, kind: input, shape index: {}]   ;;  %s2128_s8 = inlined_call_operand.vmem [shape: bf16[4,32,8], index: 8, kind: input, shape index: {}]   ;;  %s2129_s9 = inlined_call_operand.vmem [shape: f32[4,1,8], index: 9, kind: input, shape index: {}]   ;;  %s2130_s10 = inlined_call_operand.vmem [shape: f32[4,1,8], index: 10, kind: input, shape index: {}]   ;;  %s2131_s11 = inlined_call_operand.vmem [shape: f32[4,1,8], index: 11, kind: input, shape index: {}]   ;;  %s2132_s12 = inlined_call_operand.vmem [shape: bf16[4,8,8], index: 12, kind: input, shape index: {}]   ;;  %s2133_s13 = inlined_call_operand.vmem [shape: bf16[4,8,32], index: 13, kind: input, shape index: {}]   ;;  %s2134_s14 = inlined_call_operand.vmem [shape: f32[1,32], index: 14, kind: input, shape index: {}]   ;;  %s2135_s15 = inlined_call_operand.hbm [shape: f32[2,8,32], index: 15, kind: output, shape index: {}]  }
   0x1   :  { %2150 = sst [smem:[#allocation19_spill]] %s2120_s0 }
   0x2   :  { %2151 = sst [smem:[#allocation20_spill]] %s2121_s1 }
   0x3   :  { %2152 = sst [smem:[#allocation21_spill]] %s2122_s2 }
   0x4   :  { %2153 = sst [smem:[#allocation22_spill]] %s2123_s3 }
   0x5   :  { %2154 = sst [smem:[#allocation23_spill]] %s2124_s4 }
   0x6   :  { %2155 = sst [smem:[#allocation24_spill]] %s2126_s6 }
   0x7   :  { %2156 = sst [smem:[#allocation25_spill]] %s2134_s14 }
   0x8   :  { %2157 = sst [smem:[#allocation26_spill]] %s2135_s15 }
   0x9   :  { %20 = vsyncpa [#allocation4], 0 }
   0xa   :  { %22 = vsyncpa [#allocation4 + $0x1], 0  ;;  %s1842_s18 = smov 0   ;;  %s1844_s19 = smov 0  }
   0xb   :  { %s1846_s20 = smov 0   ;;  %s1848_s21 = smov 0  }
   0xc   :  { %s1850_s22 = smov 0   ;;  %s1852_s23 = smov 0  }
   0xd   :  { %s1854_s24 = smov 0   ;;  %s1856_s25 = smov 0  }
   0xe LB: > { %2158 = sst [smem:[#allocation6_spill]] %s1723_s18  ;;  %s1454_s26 = sadd.s32 4294967295, %s1751_s25   ;;  %s1751_s25 = sphi %s1856_s25, %s28_s25   ;;  %s1747_s24 = sphi %s1854_s24, %s2197_s24   ;;  %s1743_s23 = sphi %s1852_s23, %s2196_s23   ;;  %s1739_s22 = sphi %s1850_s22, %s2195_s22   ;;  %s1735_s21 = sphi %s1848_s21, %s2194_s21   ;;  %s1731_s20 = sphi %s1846_s20, %s2193_s20   ;;  %s1727_s19 = sphi %s1844_s19, %s2192_s19   ;;  %s1723_s18 = sphi %s1842_s18, %s2191_s18  }
   0xf   : > { %2159 = sst [smem:[#allocation7_spill]] %s1727_s19  ;;  %s1455_s27 = sadd.s32 4294967294, %s1751_s25  }
  0x10   : > { %2160 = sst [smem:[#allocation8_spill]] %s1731_s20  ;;  %s37_s28 = sadd.s32 1, %s1743_s23 }
  0x11   : > { %2161 = sst [smem:[#allocation9_spill]] %s1739_s22  ;;  %p38_p0 = scmp.ge.s32.totalorder %s37_s28, 4 }
  0x12   : > { %2162 = sst [smem:[#allocation10_spill]] %s1743_s23  ;;  %s40_s29 = sadd.s32 1, %s1747_s24 }
  0x13   : > { %2163 = sst [smem:[#allocation11_spill]] %s1747_s24  ;;  %p432_p1 = scmp.ne.s32.totalorder %s1731_s20, %s1727_s19 }
  0x14   : > { %2164 = sst [smem:[#allocation12_spill]] %s1751_s25  ;;  %p433_p2 = scmp.eq.s32.totalorder %s1454_s26, 7 }
  0x15   : > { %s2199_s28 = smov (%p38_p0, %s37_s28), 0  ;;  %s2201_s29 = smov (!%p38_p0, %s40_s29), %s1747_s24 }
  0x16   : > { %2165 = sst [smem:[#allocation13_spill]] %s2199_s28  ;;  %p1891_p3 = por %p433_p2, %p432_p1 }
  0x17   : > { %p438_p4 = scmp.ne.s32.totalorder %s1727_s19, %s1723_s18  ;;  %p42_p5 = scmp.ge.s32.totalorder %s2201_s29, 2 }
  0x18   : > { %s2166_s30 = scalar_select %p1891_p3, 1, 0 }
  0x19   : > { %p439_p6 = scmp.eq.s32.totalorder %s1455_s27, 7  ;;  %p1458_p7 = scmp.ge.s32.totalorder %s1751_s25, 1 }
  0x1a   : > { %2167 = sst [smem:[#allocation14_spill]] %s2166_s30  ;;  %p548_p8 = scmp.lt.s32.totalorder %s1751_s25, 9 }
  0x1b   : > { %s2203_s29 = smov (%p42_p5, %s2201_s29), 0  ;;  %p1901_p9 = por %p439_p6, %p438_p4 }
  0x1c   : > { %2168 = sst [smem:[#allocation15_spill]] %s2203_s29  ;;  %p549_p10 = pnand %p1458_p7, %p548_p8 }
  0x1d   : > { %s2169_s16 = scalar_select %p1901_p9, 1, 0 }
  0x1e   : > { %s419_s17 = ssub.s32 %s1747_s24, %s2203_s29  ;;  %s422_s26 = sadd.s32 1, %s1731_s20 }
  0x1f   : > { %2170 = sst [smem:[#allocation16_spill]] %s2169_s16  ;;  %p420_p11 = scmp.eq.s32.totalorder %s419_s17, 0 }
  0x20   : > { %552 = sbr.rel (%p549_p10) target bundleno = 2070 (0x816), region = 80 }
  0x21   : > { %s1909_s28 = scalar_select %p420_p11, %s1731_s20, %s422_s26  }
  0x23   : > { %2171 = sst [smem:[#allocation17_spill]] %s1909_s28 }
  0x27   : > { %s2142_s27 = sand.u32 1, %s1727_s19   ;;  %p637_p12 = scmp.lt.s32.totalorder %s1739_s22, 1 }
  0x28   : > { %s1459_s23 = sshll.u32 %s2142_s27, 3  ;;  %p645_p13 = scmp.lt.s32.totalorder %s1735_s21, 3 }
  0x29   : > { %s638_s18 = scalar_select %p637_p12, %s1739_s22, 1 }
  0x2a   : > { %s1918_s16 = scalar_select %p645_p13, %s1735_s21, 3 }
  0x2b   : > { %s1460_s17 = sshll.u32 %s638_s18, 3  ;;  %s2172_s0 = sld [smem:[#allocation19_spill]] }
  0x2c   : > { %s2173_s1 = sld [smem:[#allocation20_spill]]  ;;  %s1498_s25 = sshll.u32 %s1918_s16, 4 }
  0x2d   : > { %s2175_s4 = sld [smem:[#allocation23_spill]]  ;;  %s2176_s6 = sld [smem:[#allocation24_spill]] }
  0x2e   : > { %s668_s14 = scalar_lea.vmem %s2129_s9, %s1918_s16  ;;  %s1975_s15 = scalar_lea.vmem [#allocation3], %s1459_s23 }
  0x2f   : > { %p1470_p0 = scmp.ne.s32.totalorder %s1735_s21, 0 }
  0x30   : > { %vm689_vm0 = vcmask (!%p1470_p0), 261120   ;;  %s2178_s22 = sld [smem:[#allocation22_spill]] (!%p1470_p0)  ;;  %vm721_vm1 = vcmask (!%p1470_p0), 257024  }
  0x31   : > { %s640_s24 = scalar_lea.vmem %s2172_s0, %s1460_s17  ;;  %687 = sbr.rel (%p1470_p0) target bundleno = 367 (0x16f), region = 84 }
  0x32   : > { %s1926_s27 = scalar_lea.vmem %s2173_s1, %s1460_s17  ;;  %s1950_s1 = scalar_lea.vmem %s2128_s8, %s1498_s25  ;;  %v688_v0 = vld [vmem:[%s640_s24] sm:$0xff] (!%p1470_p0) }
  0x33   : > { %2174 = sst [smem:[#allocation18_spill]] %s1926_s27  ;;  %s1936_s3 = scalar_lea.vmem %s2175_s4, %s1498_s25  ;;  %v690_v1 = vsel (!%p1470_p0), %vm689_vm0, %v688_v0, 0.0 }
  0x34   : > { %s1941_s29 = scalar_lea.vmem %s2176_s6, %s1498_s25  ;;  %s671_s4 = scalar_lea.vmem %s2130_s10, %s1918_s16  ;;  %691 = vadd.xlane.f32.xlu0 (!%p1470_p0), %v690_v1 }
  0x35   : > { %s674_s6 = scalar_lea.vmem %s2131_s11, %s1918_s16  ;;  %s1468_s27 = sshll.u32 %s1918_s16, 2 }
  0x36   : > { %s1968_s20 = scalar_lea.vmem %s2132_s12, %s1468_s27  ;;  %s1973_s17 = scalar_lea.vmem %s2133_s13, %s1468_s27  ;;  %v1472_v13 = vld [vmem:[%s2178_s22] ss:$0 sm:$0xff] (!%p1470_p0) }
  0x37   : > { %s2177_s27 = sld [smem:[#allocation21_spill]] (!%p1470_p0) }
  0x3d   : > { %v1471_v11 = vld [vmem:[%s2177_s27] ss:$0 sm:$0xff] }
  0xc1   : > { %v692_v2 = vpop.xlane.xlu0 %691 }
  0xc2   : > { %v694_v3 = vmul.f32 0.03125, %v692_v2 }
  0xc4   : > { %v695_v4 = vsub.f32 %v688_v0, %v694_v3 }
  0xc6   : > { %v696_v5 = vmul.f32 %v695_v4, %v695_v4 }
  0xc8   : > { %v697_v6 = vsel %vm689_vm0, %v696_v5, 0.0 }
  0xc9   : > { %698 = vadd.xlane.f32.xlu0 %v697_v6 }
 0x156   : > { %v699_v7 = vpop.xlane.xlu0 %698 }
 0x157   : > { %v700_v8 = vmul.f32 0.03125, %v699_v7 }
 0x159   : > { %v701_v9 = vadd.f32 1e-05, %v700_v8 }
 0x15b   : > { %1645 = vrsqrt.f32 %v701_v9 }
 0x165   : > { %v1646_v10 = vpop.eup %1645 }
 0x166   : > { %v703_v12 = vmul.f32 %v1646_v10, %v695_v4 }
 0x168   : > { %v711_v14 = vmul.f32 %v1471_v11, %v703_v12 }
 0x16a   : > { %v719_v15 = vadd.f32 %v1472_v13, %v711_v14 }
 0x16c   : > { %v720_v16 = vpack.c.bf16 %v719_v15, %v719_v15 }
 0x16e   : > { %722 = vst.msk [vmem:[#allocation2] sm:$0xf] %vm721_vm1, %v720_v16 }
 0x16f PF: > { %v1647_v17 = vld [vmem:[%s1936_s3] sm:$0xff]   ;;  %v1753_v18 = vmov 0.0   ;;  %v1649_v20 = vld [vmem:[%s1936_s3 + $0x8] sm:$0xff]   ;;  %vm1754_vm2 = vmmov 0   ;;  %vm747_vm3 = vcmask 261120   ;;  %vm937_vm4 = vcmask 64512   ;;  %s2180_s18 = scalar_lea.vmem %s2127_s7, %s1918_s16 }
 0x170   : > { %1518 = vmatprep.subr.bf16.mxu0 %v1753_v18  ;;  %1526 = vmatprep.subr.bf16.mxu1 %v1753_v18  ;;  %v1648_v19 = vld [vmem:[%s1941_s29] sm:$0xff]   ;;  %v1650_v21 = vld [vmem:[%s1941_s29 + $0x8] sm:$0xff]   ;;  %s2179_s29 = scalar_lea.vmem %s2125_s5, %s1918_s16  ;;  %vm1142_vm5 = vcmask 1043456   ;;  %s1756_s23 = smov 122   ;;  %vm1015_vm6 = vcmask 15360   ;;  %vm995_vm7 = vcmask 7168   ;;  %v984_v6 = vlaneseq }
 0x171   : > { %1519 = vmatpush3.bf16.msra.mxu0 %v1647_v17  ;;  %1522 = vmatprep.mubr.msk.bf16.mxu0 %vm1754_vm2, %v1753_v18  ;;  %v1651_v23 = vld [vmem:[%s1950_s1] sm:$0xff]   ;;  %v1652_v24 = vld [vmem:[%s1950_s1 + $0x8] sm:$0xff]   ;;  %s1757_s16 = smov 1   ;;  %s1759_s27 = smov 4   ;;  %vm1027_vm10 = vcmask 31744  }
 0x172   : > { %1527 = vmatpush3.bf16.msra.mxu1 %v1648_v19  ;;  %1520 = vmatprep.subr.bf16.mxu0 %v1753_v18  ;;  %v917_v25 = vld [vmem:[%s1968_s20] sm:$0xf]  ;;  %v985_v7 = vshrl.u32 %v984_v6, 7  ;;  %s1760_s24 = smov 124   ;;  %s2181_s30 = sld [smem:[#allocation18_spill]] }
 0x173   : > { %1528 = vmatprep.subr.bf16.mxu1 %v1753_v18  ;;  %1530 = vmatprep.mubr.msk.bf16.mxu1 %vm1754_vm2, %v1753_v18  ;;  %v942_v26 = vsel %vm937_vm4, %v917_v25, 0  ;;  %v1473_v27 = vld [vmem:[%s2179_s29] ss:$0 sm:$0xff]  ;;  %s2182_s3 = sld [smem:[#allocation25_spill]] (!%p1470_p0) }
 0x174   : > { %v1477_v28 = vld [vmem:[%s2180_s18] ss:$0 sm:$0xff]  ;;  %v1005_v8 = vand.u32 1, %v985_v7  ;;  %v1017_v17 = vand.u32 2, %v985_v7 }
 0x175   : > { %1521 = vmatpush3.bf16.msra.mxu0 %v1649_v20  ;;  %v723_v22 = vld [vmem:[#allocation2] sm:$0xf] }
 0x176   : > { %1529 = vmatpush3.bf16.msra.mxu1 %v1650_v21  ;;  %1534 = vmatprep.subr.bf16.mxu0 %v1753_v18  ;;  %v1486_v30 = vld [vmem:[%s674_s6] ss:$0 sm:$0xff]  ;;  %vm1006_vm8 = vcmp.ne.s32.totalorder %v1005_v8, 0  ;;  %vm1018_vm9 = vcmp.ne.s32.totalorder %v1017_v17, 0 }
 0x177   : > { %1542 = vmatprep.subr.bf16.mxu1 %v1753_v18  ;;  %v1485_v42 = vld [vmem:[%s671_s4] ss:$0 sm:$0xff]  ;;  %s1755_s4 = smov 121  }
 0x178   : > { %1523 = vmatmul.mubr.msk.bf16.vlgmr.msra.gmra.mrb[0].mxu0 %vm747_vm3, %v723_v22  ;;  %v1481_v47 = vld [vmem:[%s668_s14] ss:$0 sm:$0xff]  ;;  %s1758_s14 = smov 2  }
 0x179   : > { %1531 = vmatmul.mubr.msk.bf16.vlgmr.msra.gmra.mrb[0].mxu1 %vm747_vm3, %v723_v22  ;;  %1535 = vmatpush3.bf16.msra.mxu0 %v1651_v23 }
 0x17a   : > { %1536 = vmatprep.subr.bf16.mxu0 %v1753_v18  ;;  %1538 = vmatprep.mubr.msk.bf16.mxu0 %vm1754_vm2, %v1753_v18 }
 0x17b   : > { %1544 = vmatprep.mubr.msk.bf16.mxu1 %vm1754_vm2, %v1753_v18 }
 0x17d   : > { %1537 = vmatpush3.bf16.msra.mxu0 %v1652_v24 }
 0x17e   : > { %1548 = vmatprep.subr.bf16.mxu0 %v1753_v18 }
 0x17f   : > { %1543 = vmatpush3.bf16.xpose.msra.mxu1 %v942_v26  ;;  %v1029_v26 = vand.u32 4, %v985_v7 }
 0x180   : > { %1539 = vmatmul.mubr.msk.bf16.vlgmr.msra.gmra.mrb[4].mxu0 %vm747_vm3, %v723_v22  ;;  %1554 = vmatprep.subr.bf16.mxu1 %v1753_v18 }
 0x181   : > { %1550 = vmatprep.mubr.msk.bf16.mxu0 %vm1754_vm2, %v1753_v18  ;;  %vm1030_vm11 = vcmp.ne.s32.totalorder %v1029_v26, 0 }
 0x24b   : > { %v785_v29 = vpop.f32.mrb[0].mxu0 }
 0x24c   : > { %v786_v31 = vadd.f32 %v1473_v27, %v785_v29  ;;  %v848_v32 = vpop.f32.mrb[0].mxu1  ;;  %v1524_v33 = vpop.f32.mrb[1].mxu0  ;;  %v987_v27 = vand.u32 127, %v984_v6 }
 0x24d   : > { %v849_v34 = vadd.f32 %v1477_v28, %v848_v32  ;;  %v788_v35 = vpop.f32.mrb[2].mxu0  ;;  %v1532_v36 = vpop.f32.mrb[1].mxu1  ;;  %v1072_v28 = vadd.s32 1, %v985_v7 }
 0x24e   : > { %v934_v37 = vadd.f32 %v1486_v30, %v786_v31  ;;  %v1525_v38 = vpop.f32.mrb[3].mxu0  ;;  %v851_v39 = vpop.f32.mrb[2].mxu1  ;;  %v925_v45 = vadd.f32 %v1485_v42, %v786_v31  ;;  %vm1071_vm13 = vcmp.le.s32.totalorder %v987_v27, %v985_v7 }
 0x24f   : > { %v936_v40 = vpack.c.bf16 %v849_v34, %v849_v34  ;;  %v1533_v41 = vpop.f32.mrb[3].mxu1  ;;  %vm1073_vm12 = vcmp.eq.s32.totalorder %v987_v27, %v1072_v28  ;;  %v1123_v38 = vld [vmem:[%s2181_s30] sm:$0xff] }
 0x250   : > { %v935_v43 = vpack.c.bf16 %v934_v37, %v934_v37  ;;  %v926_v46 = vpack.c.bf16 %v925_v45, %v925_v45  ;;  %vm1124_vm14 = vcmp.gt.f32.partialorder %v1123_v38, 0.5 }
 0x251   : > { %v1080_v44 = vsel %vm937_vm4, %v936_v40, 0 }
 0x252   : > { %1549 = vmatpush3.bf16.xpose.msra.mxu0 %v1080_v44  ;;  %1545 = vmatmul.mubr.msk.bf16.vlgmr.msra.gmra.mrb[4].mxu1 %vm937_vm4, %v935_v43 }
 0x253   : > { %1556 = vmatprep.mubr.msk.bf16.mxu1 %vm1754_vm2, %v1753_v18  ;;  %1560 = vmatprep.subr.bf16.mxu0 %v1753_v18  ;;  %v911_v48 = vpop.f32.mrb[4].mxu0 }
 0x254   : > { %v912_v49 = vadd.f32 %v1481_v47, %v911_v48  ;;  %v1540_v50 = vpop.f32.mrb[5].mxu0 }
 0x255   : > { %v914_v51 = vpop.f32.mrb[6].mxu0 }
 0x256   : > { %v1138_v52 = vpack.c.bf16 %v912_v49, %v912_v49  ;;  %v1541_v53 = vpop.f32.mrb[7].mxu0  ;;  %v1187_v49 = vld [vmem:[%s1973_s17] sm:$0xf] }
 0x257   : > { %v1192_v50 = vsel %vm1142_vm5, %v1187_v49, 0 }
 0x258   : > { %v1144_v54 = vsel %vm1142_vm5, %v1138_v52, 0 }
 0x259   : > { %1551 = vmatmul.mubr.msk.bf16.vlgmr.msra.gmra.mrb[8].mxu0 %vm937_vm4, %v926_v46  ;;  %1555 = vmatpush3.bf16.msra.mxu1 %v1144_v54 }
 0x25a   : > { %1562 = vmatprep.mubr.msk.bf16.mxu0 %vm1754_vm2, %v1753_v18  ;;  %1561 = vmatpush3.bf16.msra.mxu0 %v1192_v50 }
 0x325   : > { %v978_v55 = vpop.f32.mrb[4].mxu1 }
 0x326   : > { %989 = vrot.lane.b32.xlu1 %v978_v55, %s1755_s4  ;;  %v1546_v56 = vpop.f32.mrb[5].mxu1  ;;  %v1032_v57 = vrot.slane %v978_v55, 1 }
 0x327   : > { %v981_v58 = vpop.f32.mrb[6].mxu1 }
 0x328   : > { %1037 = vrot.lane.b32.xlu0 %v1032_v57, %s1756_s23  ;;  %v1547_v59 = vpop.f32.mrb[7].mxu1 }
 0x32a   : > { %992 = vrot.lane.b32.xlu1 %v978_v55, %s1757_s16 }
 0x32c   : > { %v2034_v60 = vpop.f32.mrb[8].mxu0  ;;  %1040 = vrot.lane.b32.xlu0 %v1032_v57, %s1758_s14 }
 0x32d   : > { %v1552_v61 = vpop.f32.mrb[9].mxu0 }
 0x32e   : > { %v1119_v62 = vpop.f32.mrb[10].mxu0 }
 0x32f   : > { %v1553_v63 = vpop.f32.mrb[11].mxu0 }
 0x398   : > { %v990_v0 = vpop.permute.xlu1 %989 }
 0x39a   : > { %v1038_v1 = vpop.permute.xlu0 %1037 }
 0x39c   : > { %v993_v4 = vpop.permute.xlu1 %992 }
 0x39d   : > { %v996_v5 = vsel %vm995_vm7, %v990_v0, %v993_v4  ;;  %v1492_v0 = vld [vmem:[%s2182_s3] ss:$0 sm:$0xff] (!%p1470_p0) }
 0x39e   : > { %v1041_v2 = vpop.permute.xlu0 %1040 }
 0x39f   : > { %v1043_v3 = vsel %vm1015_vm6, %v1038_v1, %v1041_v2 }
 0x3a0   : > { %1048 = vrot.lane.b32.xlu1 %v1043_v3, %s1757_s16  ;;  %1045 = vrot.lane.b32.xlu0 %v1043_v3, %s1755_s4 }
 0x3a4   : > { %1001 = vrot.lane.b32.xlu1 %v996_v5, %s1757_s16  ;;  %998 = vrot.lane.b32.xlu0 %v996_v5, %s1755_s4 }
 0x412   : > { %v1049_v9 = vpop.permute.xlu1 %1048  ;;  %v1046_v10 = vpop.permute.xlu0 %1045 }
 0x413   : > { %v1051_v11 = vsel %vm995_vm7, %v1046_v10, %v1049_v9 }
 0x414   : > { %v1052_v12 = vsel %vm1006_vm8, %v1051_v11, %v1043_v3 }
 0x415   : > { %1057 = vrot.lane.b32.xlu1 %v1052_v12, %s1758_s14  ;;  %1054 = vrot.lane.b32.xlu0 %v1052_v12, %s1756_s23 }
 0x416   : > { %v1002_v13 = vpop.permute.xlu1 %1001  ;;  %v999_v14 = vpop.permute.xlu0 %998 }
 0x417   : > { %v1004_v15 = vsel %vm995_vm7, %v999_v14, %v1002_v13 }
 0x418   : > { %v1007_v16 = vsel %vm1006_vm8, %v1004_v15, %v996_v5 }
 0x419   : > { %1012 = vrot.lane.b32.xlu1 %v1007_v16, %s1758_s14  ;;  %1009 = vrot.lane.b32.xlu0 %v1007_v16, %s1756_s23 }
 0x487   : > { %v1058_v18 = vpop.permute.xlu1 %1057  ;;  %v1055_v19 = vpop.permute.xlu0 %1054 }
 0x488   : > { %v1060_v20 = vsel %vm1015_vm6, %v1055_v19, %v1058_v18 }
 0x489   : > { %v1061_v21 = vsel %vm1018_vm9, %v1060_v20, %v1052_v12 }
 0x48a   : > { %1066 = vrot.lane.b32.xlu1 %v1061_v21, %s1759_s27  ;;  %1063 = vrot.lane.b32.xlu0 %v1061_v21, %s1760_s24 }
 0x48b   : > { %v1013_v22 = vpop.permute.xlu1 %1012  ;;  %v1010_v23 = vpop.permute.xlu0 %1009 }
 0x48c   : > { %v1016_v24 = vsel %vm1015_vm6, %v1010_v23, %v1013_v22 }
 0x48d   : > { %v1019_v25 = vsel %vm1018_vm9, %v1016_v24, %v1007_v16 }
 0x48e   : > { %1024 = vrot.lane.b32.xlu1 %v1019_v25, %s1759_s27  ;;  %1021 = vrot.lane.b32.xlu0 %v1019_v25, %s1760_s24 }
 0x4fc   : > { %v1067_v29 = vpop.permute.xlu1 %1066  ;;  %v1064_v30 = vpop.permute.xlu0 %1063 }
 0x4fd   : > { %v1069_v31 = vsel %vm1027_vm10, %v1064_v30, %v1067_v29 }
 0x4fe   : > { %v1070_v32 = vsel %vm1030_vm11, %v1069_v31, %v1061_v21 }
 0x4ff   : > { %v1074_v36 = vsel %vm1073_vm12, 0.0, %v1070_v32 }
 0x500   : > { %v1025_v33 = vpop.permute.xlu1 %1024  ;;  %v1022_v34 = vpop.permute.xlu0 %1021 }
 0x501   : > { %v1028_v35 = vsel %vm1027_vm10, %v1022_v34, %v1025_v33 }
 0x502   : > { %v1031_v37 = vsel %vm1030_vm11, %v1028_v35, %v1019_v25 }
 0x503   : > { %v1075_v39 = vsel %vm1071_vm13, %v1031_v37, %v1074_v36 }
 0x504   : > { %v1117_v40 = vadd.f32 %v2034_v60, %v1075_v39 }
 0x506   : > { %v1122_v41 = vmul.f32 0.17677669, %v1117_v40 }
 0x508   : > { %v1125_v42 = vsel %vm1124_vm14, -1e+09, %v1122_v41 }
 0x509   : > { %v1126_v43 = vsel %vm937_vm4, %v1125_v42, -inf }
 0x50a   : > { %1127 = vmax.xlane.f32.xlu0 %v1126_v43 }
 0x597   : > { %v1128_v44 = vpop.xlane.xlu0 %1127 }
 0x598   : > { %v1129_v45 = vsub.f32 %v1125_v42, %v1128_v44 }
 0x59a   : > { %v1130_v46 = vmul.f32 1.442695, %v1129_v45 }
 0x59c   : > { %1653 = vpow2.f32 %v1130_v46 }
 0x5a6   : > { %v1654_v47 = vpop.eup %1653 }
 0x5a7   : > { %v1132_v48 = vsel %vm937_vm4, %v1654_v47, 0.0 }
 0x5a8   : > { %1133 = vadd.xlane.f32.xlu1 %v1132_v48 }
 0x635   : > { %v1134_v51 = vpop.xlane.xlu1 %1133 }
 0x636   : > { %1655 = vrcp.f32 %v1134_v51 }
 0x640   : > { %v1656_v52 = vpop.eup %1655 }
 0x641   : > { %v1136_v53 = vmul.f32 %v1656_v52, %v1654_v47 }
 0x643   : > { %v1137_v54 = vpack.c.bf16 %v1136_v53, %v1136_v53 }
 0x645   : > { %1557 = vmatmul.mubr.msk.bf16.vlgmr.msra.gmra.mrb[8].mxu1 %vm937_vm4, %v1137_v54 }
 0x718   : > { %v1180_v55 = vpop.f32.mrb[8].mxu1 }
 0x719   : > { %v1186_v56 = vpack.c.bf16 %v1180_v55, %v1180_v55  ;;  %v1558_v57 = vpop.f32.mrb[9].mxu1 }
 0x71a   : > { %v1183_v58 = vpop.f32.mrb[10].mxu1 }
 0x71b   : > { %v1559_v59 = vpop.f32.mrb[11].mxu1  ;;  %1563 = vmatmul.mubr.msk.bf16.vlgmr.msra.gmra.mrb[12].mxu0 %vm937_vm4, %v1186_v56 }
 0x7eb   : > { %1236 = sbr.rel (%p1470_p0) target bundleno = 2034 (0x7f2), region = 88 }
 0x7ee   : > { %v1228_v60 = vpop.f32.mrb[12].mxu0 }
 0x7ef   : > { %v1564_v61 = vpop.f32.mrb[13].mxu0  ;;  %v1244_v1 = vadd.f32 (!%p1470_p0), %v1492_v0, %v1228_v60 }
 0x7f0   : > { %v1231_v62 = vpop.f32.mrb[14].mxu0 }
 0x7f1   : > { %v1565_v63 = vpop.f32.mrb[15].mxu0  ;;  %1245 = vst.msk [vmem:[%s1975_s15] sm:$0xff] (!%p1470_p0), %vm747_vm3, %v1244_v1 }
 0x7f2 PF: > { %p1493_p1 = scmp.le.s32.totalorder %s1735_s21, 0 }
 0x7f4   : > { %1249 = sbr.rel (%p1493_p1) target bundleno = 2044 (0x7fc), region = 92 }
 0x7f8   : > { %v1250_v2 = vld [vmem:[%s1975_s15] sm:$0xff] (!%p1493_p1) }
 0x7f9   : > { %v1251_v3 = vadd.f32 (!%p1493_p1), %v1250_v2, %v1228_v60 }
 0x7fb   : > { %1252 = vst.msk [vmem:[%s1975_s15] sm:$0xff] %vm747_vm3, %v1251_v3 }
 0x7fc PF: > { %s2183_s1 = sld [smem:[#allocation9_spill]]  ;;  %s2186_s26 = sld [smem:[#allocation26_spill]] }
 0x7fd   : > { %s2184_s29 = sld [smem:[#allocation7_spill]]  ;;  %s1267_s28 = sshll.u32 %s1975_s15, 4  ;;  %s1268_s28 = int_to_ptr.vmem [resolvable:$true] %s1267_s28 }
 0x7fe   : > { %s1657_s19 = scalar_lea.vmem %s1268_s28, 128  ;;  %s1761_s4 = smov [#allocation3]  }
 0x7ff   : > { %p1658_p2 = scmp.ne.s32.totalorder %s1268_s28, %s1657_s19  ;;  %s1661_s23 = sshll.u32 %s1761_s4, 4  ;;  %s1662_s23 = int_to_ptr.vmem [resolvable:$false] %s1661_s23 }
 0x800   : > { %s1663_s16 = scalar_lea.vmem %s1662_s23, 256  ;;  %p1664_p6 = scmp.lt.s32.totalorder %s1268_s28, %s1662_s23 }
 0x801   : > { %p1659_p4 = pnand %p1658_p2, %p1891_p3  ;;  %p1665_p7 = scmp.lt.s32.totalorder %s1663_s16, %s1657_s19 }
 0x802   : > { %s1495_s2 = sshll.u32 %s2183_s1, 7 }
 0x803   : > { %s2070_s25 = scalar_lea.hbm %s2186_s26, %s1495_s2  ;;  %s2187_s21 = sand.u32 1, %s2184_s29  }
 0x804   : > { %s1254_s6 = scalar_lea.sflag [#allocation4], %s2187_s21  ;;  %p1660_p5 = pneg %p1659_p4 }
 0x805   : > { %p1666_p8 = por %p1665_p7, %p1664_p6 }
 0x807   : > { %p1667_p10 = pnand %p1666_p8, %p1660_p5 }
 0x809   : > { %1670 = shalt.err (!%p1667_p10)
}
 0x80a   : > { %s1671_s15 = scalar_lea.hbm %s2070_s25, 128  ;;  %s1675_s24 = scalar_lea.hbm %s2186_s26, 256 }
 0x80b   : > { %p1672_p11 = scmp.ne.s32.totalorder %s2070_s25, %s1671_s15  ;;  %p1676_p0 = scmp.lt.u32.totalorder %s2070_s25, %s2186_s26 }
 0x80c   : > { %p1677_p1 = scmp.lt.u32.totalorder %s1675_s24, %s1671_s15  ;;  %p1679_p4 = scmp.lt.u32.totalorder %s1671_s15, %s2070_s25 }
 0x80d   : > { %p1673_p12 = pnand %p1672_p11, %p1891_p3 }
 0x80e   : > { %p1678_p2 = por %p1677_p1, %p1676_p0 }
 0x80f   : > { %p1674_p13 = pneg %p1673_p12 }
 0x810   : > { %p1680_p5 = por %p1679_p4, %p1678_p2 }
 0x812   : > { %p1681_p6 = pnand %p1680_p5, %p1674_p13 }
 0x814   : > { %1684 = shalt.err (!%p1681_p6)
}
 0x815   : > { %1566 = dma.vmem_to_hbm [thread:$0]  (%p1891_p3), %s1268_s28, 128, %s2070_s25, %s1254_s6  }
 0x816 PF: > { %s2188_s22 = sld [smem:[#allocation12_spill]]  ;;  %s2189_s3 = sld [smem:[#allocation6_spill]] }
 0x81c   : > { %p1572_p7 = scmp.ge.s32.totalorder %s2188_s22, 2  ;;  %s1279_s29 = sand.u32 1, %s2189_s3  }
 0x81d   : > { %s1280_s2 = scalar_lea.sflag [#allocation4], %s1279_s29 }
 0x81e   : > { %p1569_p8 = pnand %p1572_p7, %p1901_p9 }
 0x820   : > { %1718 = dma.done.wait (!%p1569_p8), %s1280_s2, 128  }
 0x821   : > { %1720 = vsyncadd (!%p1569_p8), %s1280_s2, 4294967168  ;;  %s28_s25 = sadd.s32 1, %s2188_s22   ;;  %s2191_s18 = sld [smem:[#allocation7_spill]] }
 0x822   : > { %p25_p10 = scmp.ge.s32.totalorder %s28_s25, 10   ;;  %s2192_s19 = sld [smem:[#allocation8_spill]] }
 0x823   : > { %s2193_s20 = sld [smem:[#allocation17_spill]]  ;;  %s2194_s21 = sld [smem:[#allocation10_spill]] }
 0x824   : > { %s2195_s22 = sld [smem:[#allocation11_spill]]  ;;  %s2196_s23 = sld [smem:[#allocation13_spill]] }
 0x825   : > { %s2197_s24 = sld [smem:[#allocation15_spill]]  ;;  %27 = sbr.rel (!%p25_p10) target bundleno = 14 (0xe), region = 160 }
 0x82c   :  { %1285 = vsyncpa [#allocation4], 1 }
 0x82d   :  { %1287 = vsyncpa [#allocation4 + $0x1], 1 }

</bundles_post_ra>
